<compile_context>
chip_gen: v5e
topology: v5e:2x2
jax: 0.10.0
libtpu: 0.0.40
codegen_flags: <defaults>
</compile_context>

<pallas_src>
import jax
import jax.numpy as jnp
from jax.experimental import pallas as pl
from jax.experimental.pallas import tpu as pltpu


def _make_kernel(training: bool):
    def kernel(m0_ref, m1_ref, m2_ref, w_ref, b_ref, p1_ref, p2_ref,
               acc0_ref, acc1_ref):
        d = pl.program_id(1)

        @pl.when(d == 0)
        def _():
            acc0_ref[...] = jnp.zeros_like(acc0_ref)
            acc1_ref[...] = jnp.zeros_like(acc1_ref)

        # (TB, L, TD) blocks; astype supports bf16 inputs (halved HBM bytes).
        m0 = m0_ref[...].astype(jnp.float32)
        m1 = m1_ref[...].astype(jnp.float32)
        m2 = m2_ref[...].astype(jnp.float32)

        w0a = w_ref[0]            # (TD,)
        w0b = w_ref[1]
        w1a = w_ref[2]
        w1b = w_ref[3]

        # Lane-dense partial logits, shape (TB, L):
        #   Y0 = W0([M0, M1]),  Y1 = W1([M0, M2])
        acc0_ref[...] += jnp.sum(m0 * w0a + m1 * w0b, axis=-1)
        acc1_ref[...] += jnp.sum(m0 * w1a + m2 * w1b, axis=-1)

        @pl.when(d == pl.num_programs(1) - 1)
        def _():
            b0 = b_ref[0]         # f32 scalars from SMEM
            b1 = b_ref[1]

            def normalize(y):
                m = jnp.max(y, axis=-1, keepdims=True)
                z = y - m
                s = jnp.sum(jnp.exp(z), axis=-1, keepdims=True)
                if training:              # log_softmax over L (dim=1)
                    return z - jnp.log(s)
                return jnp.exp(z) / s     # exact softmax over L

            p1_ref[...] = normalize(acc0_ref[...] + b0).astype(p1_ref.dtype)
            p2_ref[...] = normalize(acc1_ref[...] + b1).astype(p2_ref.dtype)

    return kernel


def _divisors(n):
    return [k for k in range(1, n + 1) if n % k == 0]


def _pick_block_d(L, D, per_operand_bytes):
    """Full D when a single batch row fits the budget; else lane-aligned split."""
    if L * D * 4 <= per_operand_bytes or D % 128 != 0:
        return D
    n128 = D // 128
    best = 128
    for k in _divisors(n128):
        td = 128 * k
        if L * td * 4 <= per_operand_bytes:
            best = max(best, td)
    return best


def _pick_block_b(B, L, td, per_operand_bytes, target_steps):
    """Largest TB (divisor of B, multiple of 8 or == B) that fits the budget
    while leaving >= target_steps batch grid steps when possible."""
    cands = [tb for tb in _divisors(B) if tb % 8 == 0 or tb == B]
    # Budget at 4 bytes/elem: the kernel materializes f32 copies regardless of
    # the input dtype, so bf16 inputs don't get over-sized tiles.
    fitting = [tb for tb in cands if tb * L * td * 4 <= per_operand_bytes]
    if not fitting:
        fitting = [min(cands)]
    good = [tb for tb in fitting if B // tb >= target_steps]
    if good:
        return max(good)
    return min(fitting)


def _default_vmem_limit_bytes():
    cap = None
    try:
        cap = pltpu.get_tpu_info().vmem_capacity_bytes
    except Exception:
        cap = None
    if cap is None:
        return 32 * 1024 * 1024           # unknown backend: be conservative
    if cap <= 64 * 1024 * 1024:
        return 32 * 1024 * 1024           # v7x-class: 64 MiB physical VMEM
    return 64 * 1024 * 1024               # v5e / v6e: 128 MiB physical VMEM


def answer_start_end(M0, M1, M2, W0_w, W0_b, W1_w, W1_b, training=True,
                     block_b=None, block_d=None,
                     per_operand_tile_bytes=2 * 1024 * 1024,
                     target_grid_steps=8,
                     vmem_limit_bytes=None):
    """Pallas implementation of AnswerStartEnd.forward.

    M0, M1, M2 : (B, L, D) float32 or bfloat16 (bf16 halves HBM traffic)
    W0_w, W1_w : (1, 2*D) float32   (torch nn.Linear weight layout)
    W0_b, W1_b : (1,)      float32
    returns p1, p2 : (B, L) float32
    """
    B, L, D = M0.shape
    assert M1.shape == (B, L, D) and M2.shape == (B, L, D)
    assert W0_w.shape == (1, 2 * D) and W1_w.shape == (1, 2 * D)

    if block_d is None:
        block_d = _pick_block_d(L, D, per_operand_tile_bytes)
    assert D % block_d == 0
    if block_b is None:
        block_b = _pick_block_b(B, L, block_d, per_operand_tile_bytes,
                                target_grid_steps)
    assert B % block_b == 0
    assert block_b % 8 == 0 or block_b == B
    if vmem_limit_bytes is None:
        vmem_limit_bytes = _default_vmem_limit_bytes()

    grid = (B // block_b, D // block_d)

    # Packed weights: rows [w0a, w0b, w1a, w1b], shape (4, D).
    w_pack = jnp.concatenate(
        [W0_w.reshape(2, D), W1_w.reshape(2, D)], axis=0).astype(jnp.float32)
    # Packed biases [b0, b1] live in SMEM.
    b_pack = jnp.concatenate(
        [W0_b.reshape(-1), W1_b.reshape(-1)]).astype(jnp.float32)

    data_spec = pl.BlockSpec((block_b, L, block_d), lambda i, d: (i, 0, d))
    w_spec = pl.BlockSpec((4, block_d), lambda i, d: (0, d))
    b_spec = pl.BlockSpec(memory_space=pltpu.MemorySpace.SMEM)
    # Lane-dense 2-D output block: (TB, L), no reshape / squeeze needed.
    out_spec = pl.BlockSpec((block_b, L), lambda i, d: (i, 0))

    grid_spec = pltpu.PrefetchScalarGridSpec(
        num_scalar_prefetch=0,
        grid=grid,
        in_specs=[data_spec, data_spec, data_spec, w_spec, b_spec],
        out_specs=[out_spec, out_spec],
        scratch_shapes=[pltpu.VMEM((block_b, L), jnp.float32),
                        pltpu.VMEM((block_b, L), jnp.float32)])

    p1, p2 = pl.pallas_call(
        _make_kernel(training),
        out_shape=(jax.ShapeDtypeStruct((B, L), jnp.float32),
                   jax.ShapeDtypeStruct((B, L), jnp.float32)),
        grid_spec=grid_spec,
        compiler_params=pltpu.CompilerParams(
            dimension_semantics=("parallel", "arbitrary"),
            vmem_limit_bytes=vmem_limit_bytes),
    )(M0, M1, M2, w_pack, b_pack)

    return p1, p2


def _reference(M0, M1, M2, W0_w, W0_b, W1_w, W1_b, training=True):
    cat01 = jnp.concatenate([M0, M1], axis=-1)
    cat02 = jnp.concatenate([M0, M2], axis=-1)
    Y0 = (cat01 @ W0_w.T + W0_b)[..., 0]
    Y1 = (cat02 @ W1_w.T + W1_b)[..., 0]
    if training:
        return jax.nn.log_softmax(Y0, axis=1), jax.nn.log_softmax(Y1, axis=1)
    return jax.nn.softmax(Y0, axis=1), jax.nn.softmax(Y1, axis=1)


def _make_inputs(key, B, L, d_model):
    k0, k1, k2, k3, k4, k5, k6 = jax.random.split(key, 7)
    M0 = jax.random.normal(k0, (B, L, d_model), dtype=jnp.float32)
    M1 = jax.random.normal(k1, (B, L, d_model), dtype=jnp.float32)
    M2 = jax.random.normal(k2, (B, L, d_model), dtype=jnp.float32)
    W0_w = jax.random.normal(k3, (1, 2 * d_model), dtype=jnp.float32) * 0.1
    W0_b = jax.random.normal(k4, (1,), dtype=jnp.float32) * 0.1
    W1_w = jax.random.normal(k5, (1, 2 * d_model), dtype=jnp.float32) * 0.1
    W1_b = jax.random.normal(k6, (1,), dtype=jnp.float32) * 0.1
    return M0, M1, M2, W0_w, W0_b, W1_w, W1_b


if __name__ == "__main__":
    key = jax.random.PRNGKey(0)

    # --- Small canonical shape (B, L, d_model) = (2, 8, 32) -----------------
    B, L, d_model = 2, 8, 32
    M0, M1, M2, W0_w, W0_b, W1_w, W1_b = _make_inputs(key, B, L, d_model)

    # Training mode -> log_softmax path (exact math).
    p1, p2 = answer_start_end(M0, M1, M2, W0_w, W0_b, W1_w, W1_b, training=True)
    jax.block_until_ready((p1, p2))
    r1, r2 = _reference(M0, M1, M2, W0_w, W0_b, W1_w, W1_b, training=True)
    assert jnp.allclose(p1, r1, atol=1e-5, rtol=1e-5)
    assert jnp.allclose(p2, r2, atol=1e-5, rtol=1e-5)

    # Eval mode -> softmax path (now exact divide, rows sum to 1).
    q1, q2 = answer_start_end(M0, M1, M2, W0_w, W0_b, W1_w, W1_b, training=False)
    jax.block_until_ready((q1, q2))
    s1, s2 = _reference(M0, M1, M2, W0_w, W0_b, W1_w, W1_b, training=False)
    assert jnp.allclose(q1, s1, atol=1e-5, rtol=1e-5)
    assert jnp.allclose(q2, s2, atol=1e-5, rtol=1e-5)
    assert jnp.allclose(jnp.sum(q1, axis=1), 1.0, atol=1e-5)
    assert jnp.allclose(jnp.sum(q2, axis=1), 1.0, atol=1e-5)

    # --- Exercise multi-step batch grid + D-split accumulation --------------
    key2 = jax.random.PRNGKey(0)
    B2, L2, d2 = 16, 16, 256
    a0, a1, a2, u0w, u0b, u1w, u1b = _make_inputs(key2, B2, L2, d2)
    t1, t2 = answer_start_end(a0, a1, a2, u0w, u0b, u1w, u1b, training=True,
                              block_b=8, block_d=128)   # grid = (2, 2)
    jax.block_until_ready((t1, t2))
    v1, v2 = _reference(a0, a1, a2, u0w, u0b, u1w, u1b, training=True)
    assert jnp.allclose(t1, v1, atol=1e-4, rtol=1e-4)
    assert jnp.allclose(t2, v2, atol=1e-4, rtol=1e-4)

    print("KERNEL_OK")
</pallas_src>

<mosaic_0001>
module attributes {stable_mosaic.version = 11 : i64} {
  func.func @kernel(%arg0: i32, %arg1: i32, %arg2: memref<2x8x32xf32, #tpu.memory_space<vmem>>, %arg3: memref<2x8x32xf32, #tpu.memory_space<vmem>>, %arg4: memref<2x8x32xf32, #tpu.memory_space<vmem>>, %arg5: memref<4x32xf32, #tpu.memory_space<vmem>>, %arg6: memref<2xf32, #tpu.memory_space<smem>>, %arg7: memref<2x8xf32, #tpu.memory_space<vmem>>, %arg8: memref<2x8xf32, #tpu.memory_space<vmem>>, %arg9: memref<2x8xf32, #tpu.memory_space<vmem>>, %arg10: memref<2x8xf32, #tpu.memory_space<vmem>>) attributes {dimension_semantics = [#tpu.dimension_semantics<parallel>, #tpu.dimension_semantics<arbitrary>], iteration_bounds = array<i64: 1, 1>, scalar_prefetch = 0 : i64, scratch_operands = 2 : i64, tpu.core_type = #tpu.core_type<tc>, window_params = [{transform_indices = @transform_0, window_bounds = array<i64: 2, 8, 32>}, {transform_indices = @transform_1, window_bounds = array<i64: 2, 8, 32>}, {transform_indices = @transform_2, window_bounds = array<i64: 2, 8, 32>}, {transform_indices = @transform_3, window_bounds = array<i64: 4, 32>}, {transform_indices = @transform_4, window_bounds = array<i64: 2>}, {transform_indices = @transform_5, window_bounds = array<i64: 2, 8>}, {transform_indices = @transform_6, window_bounds = array<i64: 2, 8>}]} {
    %c0_i32 = arith.constant 0 : i32
    %0 = arith.cmpi eq, %arg1, %c0_i32 : i32
    %1 = arith.extui %0 : i1 to i32
    %c0_i32_0 = arith.constant 0 : i32
    %2 = arith.cmpi ne, %1, %c0_i32_0 : i32
    scf.if %2 {
      %cst_25 = arith.constant 0.000000e+00 : f32
      %39 = vector.broadcast %cst_25 : f32 to vector<2x8xf32>
      %c0_26 = arith.constant 0 : index
      %c0_27 = arith.constant 0 : index
      %40 = vector.load %arg9[%c0_26, %c0_27] : memref<2x8xf32, #tpu.memory_space<vmem>>, vector<2x8xf32>
      tpu.vector_store %arg9[%c0_26, %c0_27], %39 {strides = array<i32>} : memref<2x8xf32, #tpu.memory_space<vmem>>, vector<2x8xf32>,
      %cst_28 = arith.constant 0.000000e+00 : f32
      %41 = vector.broadcast %cst_28 : f32 to vector<2x8xf32>
      %c0_29 = arith.constant 0 : index
      %c0_30 = arith.constant 0 : index
      %42 = vector.load %arg10[%c0_29, %c0_30] : memref<2x8xf32, #tpu.memory_space<vmem>>, vector<2x8xf32>
      tpu.vector_store %arg10[%c0_29, %c0_30], %41 {strides = array<i32>} : memref<2x8xf32, #tpu.memory_space<vmem>>, vector<2x8xf32>,
    } else {
    }
    %c0 = arith.constant 0 : index
    %c0_1 = arith.constant 0 : index
    %c0_2 = arith.constant 0 : index
    %3 = vector.load %arg2[%c0, %c0_1, %c0_2] : memref<2x8x32xf32, #tpu.memory_space<vmem>>, vector<2x8x32xf32>
    %c0_3 = arith.constant 0 : index
    %c0_4 = arith.constant 0 : index
    %c0_5 = arith.constant 0 : index
    %4 = vector.load %arg3[%c0_3, %c0_4, %c0_5] : memref<2x8x32xf32, #tpu.memory_space<vmem>>, vector<2x8x32xf32>
    %c0_6 = arith.constant 0 : index
    %c0_7 = arith.constant 0 : index
    %c0_8 = arith.constant 0 : index
    %5 = vector.load %arg4[%c0_6, %c0_7, %c0_8] : memref<2x8x32xf32, #tpu.memory_space<vmem>>, vector<2x8x32xf32>
    %c0_9 = arith.constant 0 : index
    %c0_10 = arith.constant 0 : index
    %6 = vector.load %arg5[%c0_9, %c0_10] : memref<4x32xf32, #tpu.memory_space<vmem>>, vector<1x32xf32>
    %7 = vector.shape_cast %6 : vector<1x32xf32> to vector<32xf32>
    %c1 = arith.constant 1 : index
    %c0_11 = arith.constant 0 : index
    %8 = vector.load %arg5[%c1, %c0_11] : memref<4x32xf32, #tpu.memory_space<vmem>>, vector<1x32xf32>
    %9 = vector.shape_cast %8 : vector<1x32xf32> to vector<32xf32>
    %c2 = arith.constant 2 : index
    %c0_12 = arith.constant 0 : index
    %10 = vector.load %arg5[%c2, %c0_12] : memref<4x32xf32, #tpu.memory_space<vmem>>, vector<1x32xf32>
    %11 = vector.shape_cast %10 : vector<1x32xf32> to vector<32xf32>
    %c3 = arith.constant 3 : index
    %c0_13 = arith.constant 0 : index
    %12 = vector.load %arg5[%c3, %c0_13] : memref<4x32xf32, #tpu.memory_space<vmem>>, vector<1x32xf32>
    %13 = vector.shape_cast %12 : vector<1x32xf32> to vector<32xf32>
    %c0_14 = arith.constant 0 : index
    %c0_15 = arith.constant 0 : index
    %14 = vector.load %arg9[%c0_14, %c0_15] : memref<2x8xf32, #tpu.memory_space<vmem>>, vector<2x8xf32>
    %15 = vector.shape_cast %7 : vector<32xf32> to vector<1x1x32xf32>
    %16 = vector.broadcast %15 : vector<1x1x32xf32> to vector<2x8x32xf32>
    %17 = arith.mulf %3, %16 : vector<2x8x32xf32>
    %18 = vector.shape_cast %9 : vector<32xf32> to vector<1x1x32xf32>
    %19 = vector.broadcast %18 : vector<1x1x32xf32> to vector<2x8x32xf32>
    %20 = arith.mulf %4, %19 : vector<2x8x32xf32>
    %21 = arith.addf %17, %20 : vector<2x8x32xf32>
    %cst = arith.constant dense<0.000000e+00> : vector<2x8xf32>
    %22 = vector.multi_reduction <add>, %21, %cst [2] : vector<2x8x32xf32> to vector<2x8xf32>
    %23 = arith.addf %14, %22 : vector<2x8xf32>
    %c0_16 = arith.constant 0 : index
    %c0_17 = arith.constant 0 : index
    %24 = vector.load %arg9[%c0_16, %c0_17] : memref<2x8xf32, #tpu.memory_space<vmem>>, vector<2x8xf32>
    tpu.vector_store %arg9[%c0_16, %c0_17], %23 {strides = array<i32>} : memref<2x8xf32, #tpu.memory_space<vmem>>, vector<2x8xf32>,
    %c0_18 = arith.constant 0 : index
    %c0_19 = arith.constant 0 : index
    %25 = vector.load %arg10[%c0_18, %c0_19] : memref<2x8xf32, #tpu.memory_space<vmem>>, vector<2x8xf32>
    %26 = vector.shape_cast %11 : vector<32xf32> to vector<1x1x32xf32>
    %27 = vector.broadcast %26 : vector<1x1x32xf32> to vector<2x8x32xf32>
    %28 = arith.mulf %3, %27 : vector<2x8x32xf32>
    %29 = vector.shape_cast %13 : vector<32xf32> to vector<1x1x32xf32>
    %30 = vector.broadcast %29 : vector<1x1x32xf32> to vector<2x8x32xf32>
    %31 = arith.mulf %5, %30 : vector<2x8x32xf32>
    %32 = arith.addf %28, %31 : vector<2x8x32xf32>
    %cst_20 = arith.constant dense<0.000000e+00> : vector<2x8xf32>
    %33 = vector.multi_reduction <add>, %32, %cst_20 [2] : vector<2x8x32xf32> to vector<2x8xf32>
    %34 = arith.addf %25, %33 : vector<2x8xf32>
    %c0_21 = arith.constant 0 : index
    %c0_22 = arith.constant 0 : index
    %35 = vector.load %arg10[%c0_21, %c0_22] : memref<2x8xf32, #tpu.memory_space<vmem>>, vector<2x8xf32>
    tpu.vector_store %arg10[%c0_21, %c0_22], %34 {strides = array<i32>} : memref<2x8xf32, #tpu.memory_space<vmem>>, vector<2x8xf32>,
    %c0_i32_23 = arith.constant 0 : i32
    %36 = arith.cmpi eq, %arg1, %c0_i32_23 : i32
    %37 = arith.extui %36 : i1 to i32
    %c0_i32_24 = arith.constant 0 : i32
    %38 = arith.cmpi ne, %37, %c0_i32_24 : i32
    scf.if %38 {
      %c0_25 = arith.constant 0 : index
      %39 = memref.load %arg6[%c0_25] : memref<2xf32, #tpu.memory_space<smem>>
      %c1_26 = arith.constant 1 : index
      %40 = memref.load %arg6[%c1_26] : memref<2xf32, #tpu.memory_space<smem>>
      %c0_27 = arith.constant 0 : index
      %c0_28 = arith.constant 0 : index
      %41 = vector.load %arg9[%c0_27, %c0_28] : memref<2x8xf32, #tpu.memory_space<vmem>>, vector<2x8xf32>
      %42 = vector.broadcast %39 : f32 to vector<2x8xf32>
      %43 = arith.addf %41, %42 : vector<2x8xf32>
      %cst_29 = arith.constant dense<0xFF800000> : vector<2xf32>
      %44 = vector.multi_reduction <maximumf>, %43, %cst_29 [1] : vector<2x8xf32> to vector<2xf32>
      %45 = vector.shape_cast %44 : vector<2xf32> to vector<2x1xf32>
      %46 = vector.broadcast %45 : vector<2x1xf32> to vector<2x8xf32>
      %47 = arith.subf %43, %46 : vector<2x8xf32>
      %48 = math.exp %47 : vector<2x8xf32>
      %cst_30 = arith.constant dense<0.000000e+00> : vector<2xf32>
      %49 = vector.multi_reduction <add>, %48, %cst_30 [1] : vector<2x8xf32> to vector<2xf32>
      %50 = vector.shape_cast %49 : vector<2xf32> to vector<2x1xf32>
      %51 = math.log %50 : vector<2x1xf32>
      %52 = vector.broadcast %51 : vector<2x1xf32> to vector<2x8xf32>
      %53 = arith.subf %47, %52 : vector<2x8xf32>
      %c0_31 = arith.constant 0 : index
      %c0_32 = arith.constant 0 : index
      %54 = vector.load %arg7[%c0_31, %c0_32] : memref<2x8xf32, #tpu.memory_space<vmem>>, vector<2x8xf32>
      tpu.vector_store %arg7[%c0_31, %c0_32], %53 {strides = array<i32>} : memref<2x8xf32, #tpu.memory_space<vmem>>, vector<2x8xf32>,
      %c0_33 = arith.constant 0 : index
      %c0_34 = arith.constant 0 : index
      %55 = vector.load %arg10[%c0_33, %c0_34] : memref<2x8xf32, #tpu.memory_space<vmem>>, vector<2x8xf32>
      %56 = vector.broadcast %40 : f32 to vector<2x8xf32>
      %57 = arith.addf %55, %56 : vector<2x8xf32>
      %cst_35 = arith.constant dense<0xFF800000> : vector<2xf32>
      %58 = vector.multi_reduction <maximumf>, %57, %cst_35 [1] : vector<2x8xf32> to vector<2xf32>
      %59 = vector.shape_cast %58 : vector<2xf32> to vector<2x1xf32>
      %60 = vector.broadcast %59 : vector<2x1xf32> to vector<2x8xf32>
      %61 = arith.subf %57, %60 : vector<2x8xf32>
      %62 = math.exp %61 : vector<2x8xf32>
      %cst_36 = arith.constant dense<0.000000e+00> : vector<2xf32>
      %63 = vector.multi_reduction <add>, %62, %cst_36 [1] : vector<2x8xf32> to vector<2xf32>
      %64 = vector.shape_cast %63 : vector<2xf32> to vector<2x1xf32>
      %65 = math.log %64 : vector<2x1xf32>
      %66 = vector.broadcast %65 : vector<2x1xf32> to vector<2x8xf32>
      %67 = arith.subf %61, %66 : vector<2x8xf32>
      %c0_37 = arith.constant 0 : index
      %c0_38 = arith.constant 0 : index
      %68 = vector.load %arg8[%c0_37, %c0_38] : memref<2x8xf32, #tpu.memory_space<vmem>>, vector<2x8xf32>
      tpu.vector_store %arg8[%c0_37, %c0_38], %67 {strides = array<i32>} : memref<2x8xf32, #tpu.memory_space<vmem>>, vector<2x8xf32>,
    } else {
    }
    return
  }
  func.func @transform_0(%arg0: i32, %arg1: i32) -> (i32, i32, i32) {
    %c0_i32 = arith.constant 0 : i32
    %c0_i32_0 = arith.constant 0 : i32
    return %arg0, %c0_i32, %arg1 : i32, i32, i32
  }
  func.func @transform_1(%arg0: i32, %arg1: i32) -> (i32, i32, i32) {
    %c0_i32 = arith.constant 0 : i32
    %c0_i32_0 = arith.constant 0 : i32
    return %arg0, %c0_i32, %arg1 : i32, i32, i32
  }
  func.func @transform_2(%arg0: i32, %arg1: i32) -> (i32, i32, i32) {
    %c0_i32 = arith.constant 0 : i32
    %c0_i32_0 = arith.constant 0 : i32
    return %arg0, %c0_i32, %arg1 : i32, i32, i32
  }
  func.func @transform_3(%arg0: i32, %arg1: i32) -> (i32, i32) {
    %c0_i32 = arith.constant 0 : i32
    %c0_i32_0 = arith.constant 0 : i32
    return %c0_i32, %arg1 : i32, i32
  }
  func.func @transform_4(%arg0: i32, %arg1: i32) -> i32 {
    %c0_i32 = arith.constant 0 : i32
    %c0_i32_0 = arith.constant 0 : i32
    return %c0_i32 : i32
  }
  func.func @transform_5(%arg0: i32, %arg1: i32) -> (i32, i32) {
    %c0_i32 = arith.constant 0 : i32
    %c0_i32_0 = arith.constant 0 : i32
    return %arg0, %c0_i32 : i32, i32
  }
  func.func @transform_6(%arg0: i32, %arg1: i32) -> (i32, i32) {
    %c0_i32 = arith.constant 0 : i32
    %c0_i32_0 = arith.constant 0 : i32
    return %arg0, %c0_i32 : i32, i32
  }
}

</mosaic_0001>

<bundles_post_ra>
// kernel: tpu_custom_call.1
= control target key start
LH: loop header
LB: loop body
LE: loop exit
PB: predicated region body
PF: predicated region fallthrough
CT: control target
= control target key end

     0   :  { %12 = vsyncpa [#allocation5], 0  ;;  %s510_s0 = inlined_call_operand.hbm [shape: f32[2,8,32], index: 0, kind: input, shape index: {}]   ;;  %s511_s1 = inlined_call_operand.hbm [shape: f32[2,8,32], index: 1, kind: input, shape index: {}]   ;;  %s512_s2 = inlined_call_operand.hbm [shape: f32[2,8,32], index: 2, kind: input, shape index: {}]   ;;  %s513_s3 = inlined_call_operand.hbm [shape: f32[4,32], index: 3, kind: input, shape index: {}]   ;;  %s514_s4 = inlined_call_operand.vmem [shape: f32[2], index: 4, kind: input, shape index: {}]   ;;  %s515_s5 = inlined_call_operand.hbm [shape: f32[2,8], index: 5, kind: output, shape index: {0}]   ;;  %s516_s6 = inlined_call_operand.hbm [shape: f32[2,8], index: 6, kind: output, shape index: {1}]  }
   0x1   :  { %13 = vsyncpa [#allocation9], 0 }
   0x2   :  { %14 = vsyncpa [#allocation12], 0 }
   0x3   :  { %15 = vsyncpa [#allocation7], 0 }
   0x4   :  { %16 = vsyncpa [#allocation6], 0 }
   0x5   :  { %17 = vsyncpa [#allocation16], 0  ;;  %s35_s23 = sshll.u32 %s511_s1, 4  ;;  %s430_s24 = smov [#allocation8]   ;;  %s36_s23 = int_to_ptr.hbm [resolvable:$true] %s35_s23 }
   0x6   :  { %s37_s25 = sshll.u32 %s430_s24, 4  ;;  %s22_s28 = sshll.u32 %s510_s0, 4  ;;  %s38_s25 = int_to_ptr.vmem [resolvable:$true] %s37_s25  ;;  %s23_s28 = int_to_ptr.hbm [resolvable:$true] %s22_s28 }
   0x7   :  { %s431_s29 = smov 128   ;;  %s432_s30 = smov 8  }
   0x8   :  { %43 = dma.hbm_to_vmem [thread:$0]  %s36_s23, 256, %s38_s25, [#allocation9], %s431_s29, %s431_s29, %s432_s30  }
   0x9   :  { %s433_s7 = smov [#allocation4]   ;;  %s48_s11 = sshll.u32 %s512_s2, 4  ;;  %s49_s11 = int_to_ptr.hbm [resolvable:$true] %s48_s11 }
   0xa   :  { %s24_s8 = sshll.u32 %s433_s7, 4  ;;  %s62_s13 = sshll.u32 %s513_s3, 4  ;;  %s25_s8 = int_to_ptr.vmem [resolvable:$true] %s24_s8  ;;  %s63_s13 = int_to_ptr.hbm [resolvable:$true] %s62_s13 }
   0xb   :  { %30 = dma.hbm_to_vmem [thread:$0]  %s23_s28, 256, %s25_s8, [#allocation5], %s431_s29, %s431_s29, %s432_s30  }
   0xc   :  { %s434_s14 = smov [#allocation10]   ;;  %s435_s0 = smov [#allocation11]  }
   0xd   :  { %s50_s15 = sshll.u32 %s434_s14, 4  ;;  %s64_s16 = sshll.u32 %s435_s0, 4  ;;  %s51_s15 = int_to_ptr.vmem [resolvable:$true] %s50_s15  ;;  %s65_s16 = int_to_ptr.vmem [resolvable:$true] %s64_s16 }
   0xe   :  { %56 = dma.hbm_to_vmem [thread:$0]  %s49_s11, 256, %s51_s15, [#allocation9], %s431_s29, %s431_s29, %s432_s30  }
   0xf   :  { %s73_s19 = sshll.u32 %s514_s4, 4  ;;  %s436_s2 = smov [#allocation13]   ;;  %s74_s19 = int_to_ptr.vmem [resolvable:$true] %s73_s19 }
  0x10   :  { %67 = dma.hbm_to_vmem [thread:$0]  %s63_s13, 64, %s65_s16, [#allocation12]  }
  0x11   :  { %76 = dma.vmem_to_smem %s74_s19, 16, %s436_s2, [#allocation7]  }
  0x12   :  { %418 = dma.done.wait [#allocation5], 256  }
  0x13   :  { %419 = vsyncadd [#allocation5], 4294967040 }
  0x14   :  { %420 = dma.done.wait [#allocation9], 512  }
  0x15   :  { %421 = vsyncadd [#allocation9], 4294966784 }
  0x16   :  { %422 = dma.done.wait [#allocation12], 64  }
  0x17   :  { %423 = vsyncadd [#allocation12], 4294967232 }
  0x18   :  { %424 = dma.done.wait [#allocation7], 16  }
  0x19   :  { %425 = vsyncadd [#allocation7], 4294967280 }
  0x1a   :  { %97 = sfence }
  0x1b   :  { %v105_v0 = vld [vmem:[#allocation4] sm:$0xff]  ;;  %v250_v2 = vld [vmem:[#allocation11 + $0x2] ss:$0 sm:$0xff]  ;;  %v251_v3 = vld [vmem:[#allocation11 + $0x3] ss:$0 sm:$0xff]  ;;  %vm124_vm0 = vcmask 261120   ;;  %v133_v28 = vlaneseq }
  0x1c   :  { %v109_v1 = vld [vmem:[#allocation10] sm:$0xff]  ;;  %v107_v4 = vld [vmem:[#allocation8] sm:$0xff]  ;;  %v145_v5 = vmul.f32 %v250_v2, %v105_v0  ;;  %v106_v9 = vld [vmem:[#allocation4 + $0x8] sm:$0xff]  ;;  %vm102_vm1 = vcmask 58368   ;;  %v437_v26 = vmov 0.0   ;;  %vm137_vm2 = vcmask 1041409  }
  0x1d   :  { %v148_v6 = vmul.f32 %v251_v3, %v109_v1  ;;  %v252_v7 = vld [vmem:[#allocation11] ss:$0 sm:$0xff]  ;;  %v253_v8 = vld [vmem:[#allocation11 + $0x1] ss:$0 sm:$0xff]  ;;  %v110_v10 = vld [vmem:[#allocation10 + $0x8] sm:$0xff]  ;;  %v146_v11 = vmul.f32 %v250_v2, %v106_v9  ;;  %v134_v30 = vand.u32 127, %v133_v28 }
  0x1e   :  { %v108_v12 = vld [vmem:[#allocation8 + $0x8] sm:$0xff]  ;;  %v117_v14 = vmul.f32 %v252_v7, %v105_v0  ;;  %v120_v15 = vmul.f32 %v253_v8, %v107_v4  ;;  %v149_v16 = vmul.f32 %v251_v3, %v110_v10  ;;  %v118_v19 = vmul.f32 %v252_v7, %v106_v9  ;;  %104 = vst.msk [vmem:[#allocation3] sm:$0x3] %vm102_vm1, %v437_v26  ;;  %s169_s3 = sld [smem:[#allocation13]]  ;;  %s438_s20 = smov [#allocation14]  }
  0x1f   :  { %v150_v13 = vadd.f32 %v148_v6, %v145_v5  ;;  %v121_v20 = vmul.f32 %v253_v8, %v108_v12  ;;  %103 = vst.msk [vmem:[#allocation2] sm:$0x3] %vm102_vm1, %v437_v26  ;;  %s239_s4 = sld [smem:[#allocation13 + $0x1]]  ;;  %s208_s21 = sshll.u32 %s438_s20, 4  ;;  %s209_s21 = int_to_ptr.vmem [resolvable:$true] %s208_s21 }
  0x20   :  { %v122_v18 = vadd.f32 %v120_v15, %v117_v14  ;;  %v151_v22 = vadd.f32 %v149_v16, %v146_v11  ;;  %s210_s24 = sshll.u32 %s515_s5, 4  ;;  %s439_s25 = smov [#allocation15]   ;;  %s211_s24 = int_to_ptr.hbm [resolvable:$true] %s210_s24 }
  0x21   :  { %v152_v17 = vsel %vm124_vm0, %v150_v13, 0.0  ;;  %v123_v23 = vadd.f32 %v121_v20, %v118_v19  ;;  %s219_s26 = sshll.u32 %s439_s25, 4  ;;  %s221_s29 = sshll.u32 %s516_s6, 4  ;;  %s220_s26 = int_to_ptr.vmem [resolvable:$true] %s219_s26  ;;  %s222_s29 = int_to_ptr.hbm [resolvable:$true] %s221_s29 }
  0x22   :  { %153 = vadd.xlane.f32.xlu1 %v152_v17  ;;  %v125_v21 = vsel %vm124_vm0, %v122_v18, 0.0  ;;  %v155_v24 = vsel %vm124_vm0, %v151_v22, 0.0 }
  0x23   :  { %126 = vadd.xlane.f32.xlu0 %v125_v21  ;;  %v128_v25 = vsel %vm124_vm0, %v123_v23, 0.0 }
  0x24   :  { %v172_v43 = vstv %s169_s3 }
  0x25   :  { %v143_v33 = vld [vmem:[#allocation3] sm:$0x3]  ;;  %v188_v48 = vstv %s239_s4 }
  0x26   :  { %v115_v38 = vld [vmem:[#allocation2] sm:$0x3] }
  0x2a   :  { %156 = vadd.xlane.f32.xlu1 %v155_v24 }
  0x2b   :  { %129 = vadd.xlane.f32.xlu0 %v128_v25 }
  0x95   :  { %v154_v27 = vpop.xlane.xlu1 %153 }
  0x96   :  { %v127_v29 = vpop.xlane.xlu0 %126  ;;  %v160_v31 = vperm.slane %v154_v27, %v134_v30 }
  0x97   :  { %v135_v36 = vperm.slane %v127_v29, %v134_v30 }
  0x9d   :  { %v157_v32 = vpop.xlane.xlu1 %156 }
  0x9e   :  { %v161_v34 = vperm.slane %v157_v32, %v134_v30  ;;  %v130_v35 = vpop.xlane.xlu0 %129 }
  0x9f   :  { %v136_v39 = vperm.slane %v130_v35, %v134_v30 }
  0xa0   :  { %v162_v37 = vsel %vm137_vm2, %v161_v34, %v160_v31 }
  0xa1   :  { %v164_v40 = vadd.f32 %v162_v37, %v143_v33  ;;  %v138_v41 = vsel %vm137_vm2, %v136_v39, %v135_v36 }
  0xa2   :  { %v140_v42 = vadd.f32 %v138_v41, %v115_v38 }
  0xa3   :  { %165 = vst.msk [vmem:[#allocation3] sm:$0x3] %vm102_vm1, %v164_v40 }
  0xa4   :  { %142 = vst.msk [vmem:[#allocation2] sm:$0x3] %vm102_vm1, %v140_v42 }
  0xaa   :  { %v187_v47 = vld [vmem:[#allocation3] sm:$0x3] }
  0xab   :  { %v171_v44 = vld [vmem:[#allocation2] sm:$0x3]  ;;  %v189_v49 = vadd.f32 %v188_v48, %v187_v47 }
  0xac   :  { %v173_v45 = vadd.f32 %v172_v43, %v171_v44 }
  0xad   :  { %v190_v50 = vsel %vm102_vm1, %v189_v49, -inf }
  0xae   :  { %v174_v46 = vsel %vm102_vm1, %v173_v45, -inf }
  0xaf   :  { %175 = vmax.xlane.f32.xlu2 %v174_v46 }
  0xb7   :  { %191 = vmax.xlane.f32.xlu2 %v190_v50 }
 0x122   :  { %v176_v51 = vpop.xlane.xlu2 %175 }
 0x123   :  { %v177_v52 = vsub.f32 %v173_v45, %v176_v51 }
 0x125   :  { %v178_v53 = vmul.f32 1.442695, %v177_v52 }
 0x127   :  { %254 = vpow2.f32 %v178_v53 }
 0x12a   :  { %v192_v54 = vpop.xlane.xlu2 %191 }
 0x12b   :  { %v193_v55 = vsub.f32 %v189_v49, %v192_v54 }
 0x12d   :  { %v255_v56 = vpop.eup %254  ;;  %v194_v57 = vmul.f32 1.442695, %v193_v55 }
 0x12e   :  { %v180_v58 = vsel %vm102_vm1, %v255_v56, 0.0 }
 0x12f   :  { %256 = vpow2.f32 %v194_v57  ;;  %181 = vadd.xlane.f32.xlu0 %v180_v58 }
 0x135   :  { %v257_v59 = vpop.eup %256 }
 0x136   :  { %v196_v60 = vsel %vm102_vm1, %v257_v59, 0.0 }
 0x137   :  { %197 = vadd.xlane.f32.xlu1 %v196_v60 }
 0x1a2   :  { %v182_v61 = vpop.xlane.xlu0 %181 }
 0x1a3   :  { %258 = vlog2.f32 %v182_v61 }
 0x1a9   :  { %v259_v62 = vpop.eup %258 }
 0x1aa   :  { %v184_v63 = vmul.f32 0.6931472, %v259_v62  ;;  %v198_v0 = vpop.xlane.xlu1 %197 }
 0x1ab   :  { %260 = vlog2.f32 %v198_v0 }
 0x1ac   :  { %v185_v1 = vsub.f32 %v177_v52, %v184_v63 }
 0x1ae   :  { %186 = vst.msk [vmem:[#allocation14] sm:$0x3] %vm102_vm1, %v185_v1 }
 0x1af   :  { %213 = dma.vmem_to_hbm [thread:$0]  %s209_s21, 32, %s211_s24, [#allocation6]  }
 0x1b1   :  { %v261_v2 = vpop.eup %260 }
 0x1b2   :  { %v200_v3 = vmul.f32 0.6931472, %v261_v2 }
 0x1b4   :  { %v201_v4 = vsub.f32 %v193_v55, %v200_v3 }
 0x1b6   :  { %202 = vst.msk [vmem:[#allocation15] sm:$0x3] %vm102_vm1, %v201_v4 }
 0x1b7   :  { %224 = dma.vmem_to_hbm [thread:$0]  %s220_s26, 32, %s222_s29, [#allocation16]  }
 0x1b8   :  { %426 = dma.done.wait [#allocation6], 32  }
 0x1b9   :  { %427 = vsyncadd [#allocation6], 4294967264 }
 0x1ba   :  { %428 = dma.done.wait [#allocation16], 32  }
 0x1bb   :  { %429 = vsyncadd [#allocation16], 4294967264 }
 0x1bc   :  { %233 = vsyncpa [#allocation5], 1 }
 0x1bd   :  { %234 = vsyncpa [#allocation9], 1 }
 0x1be   :  { %235 = vsyncpa [#allocation12], 1 }
 0x1bf   :  { %236 = vsyncpa [#allocation6], 1 }
 0x1c0   :  { %237 = vsyncpa [#allocation16], 1 }
 0x1c1   :  { %238 = vsyncpa [#allocation7], 1 }

</bundles_post_ra>
